<compile_context>
chip_gen: v7x
topology: tpu7x:2x2x1
jax: 0.10.0
libtpu: 0.0.40
codegen_flags: <defaults>
</compile_context>

<pallas_src>
import functools

import jax
import jax.numpy as jnp
from jax.experimental import pallas as pl
from jax.experimental.pallas import tpu as pltpu


# ----------------------------------------------------------------------------
# Single fused kernel: matmul (1x1 conv with scale pre-folded into the weight)
# + per-channel batch statistics + BatchNorm affine apply.
# ----------------------------------------------------------------------------
def fused_kernel(x_ref, w_ref, g_ref, b_ref, o_ref, *, eps, m_rows):
    # (M, Cin) @ (Cin, Cpad) -> (M, Cpad) on the MXU, f32 accumulate.
    y = jnp.dot(x_ref[...], w_ref[...], preferred_element_type=jnp.float32)

    inv_m = 1.0 / float(m_rows)
    mean = jnp.sum(y, axis=0, keepdims=True) * inv_m          # (1, Cpad)
    centered = y - mean
    var = jnp.sum(centered * centered, axis=0, keepdims=True) * inv_m  # biased

    inv_std = jax.lax.rsqrt(var + eps)                         # (1, Cpad)
    # y_hat = (y - mean) * inv_std * gamma + beta   (padded lanes: g=b=0 -> 0)
    o_ref[...] = centered * (g_ref[...] * inv_std) + b_ref[...]


def fused_mul_conv_bn(x94, x89, w, gamma, beta, eps=1e-3):
    """x94: (1, Cin, 1, 1), x89: (N, Cin, H, W), w: (Cout, Cin) -> (N, Cout, H, W)."""
    N, Cin, H, W = x89.shape
    Cout = w.shape[0]
    M = N * H * W
    assert M % 8 == 0, "row count must be sublane-aligned"

    # Lane-dense output width (pad Cout up to a multiple of 128).
    C_pad = ((Cout + 127) // 128) * 128

    # NCHW -> (M, Cin) rows (NHWC-flattened).
    # TODO(synk): if the surrounding graph can stay NHWC, these transposes go away.
    x_rows = jnp.transpose(x89, (0, 2, 3, 1)).reshape(M, Cin).astype(jnp.float32)

    # Fold the per-channel scale into the weight: (x * s) @ W^T == x @ (diag(s) W^T).
    s_col = x94.reshape(Cin, 1).astype(jnp.float32)
    w_scaled = s_col * jnp.transpose(w.astype(jnp.float32))        # (Cin, Cout)
    w_pad = jnp.pad(w_scaled, ((0, 0), (0, C_pad - Cout)))          # (Cin, C_pad)

    g_pad = jnp.pad(gamma.reshape(1, Cout).astype(jnp.float32),
                    ((0, 0), (0, C_pad - Cout)))
    b_pad = jnp.pad(beta.reshape(1, Cout).astype(jnp.float32),
                    ((0, 0), (0, C_pad - Cout)))

    kernel = functools.partial(fused_kernel, eps=float(eps), m_rows=M)

    out_pad = pl.pallas_call(
        kernel,
        out_shape=jax.ShapeDtypeStruct((M, C_pad), jnp.float32),
        grid_spec=pltpu.PrefetchScalarGridSpec(
            num_scalar_prefetch=0,
            grid=(1,),
            in_specs=[
                pl.BlockSpec((M, Cin), lambda i: (0, 0)),     # activations (rows)
                pl.BlockSpec((Cin, C_pad), lambda i: (0, 0)), # scale-folded weight
                pl.BlockSpec((1, C_pad), lambda i: (0, 0)),   # gamma (padded)
                pl.BlockSpec((1, C_pad), lambda i: (0, 0)),   # beta  (padded)
            ],
            out_specs=pl.BlockSpec((M, C_pad), lambda i: (0, 0)),
        ),
        compiler_params=pltpu.CompilerParams(
            dimension_semantics=("parallel",)),
    )(x_rows, w_pad, g_pad, b_pad)

    # Slice away the lane padding, (M, Cout) -> NCHW.
    out_rows = out_pad[:, :Cout]
    return jnp.transpose(out_rows.reshape(N, H, W, Cout), (0, 3, 1, 2))


if __name__ == "__main__":
    # Module channel counts are fixed (288 -> 48); use a small spatial extent.
    N, Cin, Cout, H, W = 1, 288, 48, 16, 16

    key = jax.random.PRNGKey(0)
    k1, k2, k3 = jax.random.split(key, 3)

    # Deterministic synthetic inputs / parameters.
    x89 = jax.random.normal(k1, (N, Cin, H, W), dtype=jnp.float32)
    x94 = jax.random.normal(k2, (1, Cin, 1, 1), dtype=jnp.float32)

    # Conv2d(288, 48, 1x1, bias=False) weight, kaiming-uniform-ish scale.
    bound = 1.0 / (Cin ** 0.5)
    conv_w = jax.random.uniform(k3, (Cout, Cin), dtype=jnp.float32,
                                minval=-bound, maxval=bound)

    # BatchNorm2d(48) default init: weight=1, bias=0; eps=0.001 per the module.
    gamma = jnp.ones((Cout,), dtype=jnp.float32)
    beta = jnp.zeros((Cout,), dtype=jnp.float32)

    out = fused_mul_conv_bn(x94, x89, conv_w, gamma, beta, eps=1e-3)
    jax.block_until_ready(out)
    assert out.shape == (N, Cout, H, W)
    assert bool(jnp.all(jnp.isfinite(out)))
    print("KERNEL_OK")
</pallas_src>

<mosaic_0001>
module attributes {stable_mosaic.version = 11 : i64} {
  func.func @fused_kernel(%arg0: i32, %arg1: memref<256x288xf32, #tpu.memory_space<vmem>>, %arg2: memref<288x128xf32, #tpu.memory_space<vmem>>, %arg3: memref<1x128xf32, #tpu.memory_space<vmem>>, %arg4: memref<1x128xf32, #tpu.memory_space<vmem>>, %arg5: memref<256x128xf32, #tpu.memory_space<vmem>>) attributes {dimension_semantics = [#tpu.dimension_semantics<parallel>], iteration_bounds = array<i64: 1>, scalar_prefetch = 0 : i64, scratch_operands = 0 : i64, tpu.core_type = #tpu.core_type<tc>, window_params = [{pipeline_mode = #tpu.pipeline_mode<synchronous>, transform_indices = @transform_0, window_bounds = array<i64: 256, 288>}, {pipeline_mode = #tpu.pipeline_mode<synchronous>, transform_indices = @transform_1, window_bounds = array<i64: 288, 128>}, {pipeline_mode = #tpu.pipeline_mode<synchronous>, transform_indices = @transform_2, window_bounds = array<i64: 1, 128>}, {pipeline_mode = #tpu.pipeline_mode<synchronous>, transform_indices = @transform_3, window_bounds = array<i64: 1, 128>}, {pipeline_mode = #tpu.pipeline_mode<synchronous>, transform_indices = @transform_4, window_bounds = array<i64: 256, 128>}]} {
    %c0 = arith.constant 0 : index
    %c0_0 = arith.constant 0 : index
    %0 = vector.load %arg1[%c0, %c0_0] : memref<256x288xf32, #tpu.memory_space<vmem>>, vector<256x288xf32>
    %c0_1 = arith.constant 0 : index
    %c0_2 = arith.constant 0 : index
    %1 = vector.load %arg2[%c0_1, %c0_2] : memref<288x128xf32, #tpu.memory_space<vmem>>, vector<288x128xf32>
    %cst = arith.constant dense<0.000000e+00> : vector<256x128xf32>
    %2 = tpu.matmul %0, %1, %cst {dimension_numbers = #tpu.dot_dimension_numbers<[1], [0], [0], [1], [0, 0, 1, 1], [], []>} : vector<256x288xf32>, vector<288x128xf32>, vector<256x128xf32> -> vector<256x128xf32>
    %cst_3 = arith.constant dense<0.000000e+00> : vector<128xf32>
    %3 = vector.multi_reduction <add>, %2, %cst_3 [0] : vector<256x128xf32> to vector<128xf32>
    %4 = vector.shape_cast %3 : vector<128xf32> to vector<1x128xf32>
    %cst_4 = arith.constant 3.906250e-03 : f32
    %5 = vector.broadcast %cst_4 : f32 to vector<1x128xf32>
    %6 = arith.mulf %4, %5 : vector<1x128xf32>
    %7 = vector.broadcast %6 : vector<1x128xf32> to vector<256x128xf32>
    %8 = arith.subf %2, %7 : vector<256x128xf32>
    %9 = arith.mulf %8, %8 : vector<256x128xf32>
    %cst_5 = arith.constant dense<0.000000e+00> : vector<128xf32>
    %10 = vector.multi_reduction <add>, %9, %cst_5 [0] : vector<256x128xf32> to vector<128xf32>
    %11 = vector.shape_cast %10 : vector<128xf32> to vector<1x128xf32>
    %cst_6 = arith.constant 3.906250e-03 : f32
    %12 = vector.broadcast %cst_6 : f32 to vector<1x128xf32>
    %13 = arith.mulf %11, %12 : vector<1x128xf32>
    %cst_7 = arith.constant 1.000000e-03 : f32
    %14 = vector.broadcast %cst_7 : f32 to vector<1x128xf32>
    %15 = arith.addf %13, %14 : vector<1x128xf32>
    %16 = math.rsqrt %15 : vector<1x128xf32>
    %c0_8 = arith.constant 0 : index
    %c0_9 = arith.constant 0 : index
    %17 = vector.load %arg3[%c0_8, %c0_9] : memref<1x128xf32, #tpu.memory_space<vmem>>, vector<1x128xf32>
    %18 = arith.mulf %17, %16 : vector<1x128xf32>
    %19 = vector.broadcast %18 : vector<1x128xf32> to vector<256x128xf32>
    %20 = arith.mulf %8, %19 : vector<256x128xf32>
    %c0_10 = arith.constant 0 : index
    %c0_11 = arith.constant 0 : index
    %21 = vector.load %arg4[%c0_10, %c0_11] : memref<1x128xf32, #tpu.memory_space<vmem>>, vector<1x128xf32>
    %22 = vector.broadcast %21 : vector<1x128xf32> to vector<256x128xf32>
    %23 = arith.addf %20, %22 : vector<256x128xf32>
    %c0_12 = arith.constant 0 : index
    %c0_13 = arith.constant 0 : index
    %24 = vector.load %arg5[%c0_12, %c0_13] : memref<256x128xf32, #tpu.memory_space<vmem>>, vector<256x128xf32>
    tpu.vector_store %arg5[%c0_12, %c0_13], %23 {strides = array<i32>} : memref<256x128xf32, #tpu.memory_space<vmem>>, vector<256x128xf32>,
    return
  }
  func.func @transform_0(%arg0: i32) -> (i32, i32) {
    %c0_i32 = arith.constant 0 : i32
    %c0_i32_0 = arith.constant 0 : i32
    %c0_i32_1 = arith.constant 0 : i32
    return %c0_i32, %c0_i32_0 : i32, i32
  }
  func.func @transform_1(%arg0: i32) -> (i32, i32) {
    %c0_i32 = arith.constant 0 : i32
    %c0_i32_0 = arith.constant 0 : i32
    %c0_i32_1 = arith.constant 0 : i32
    return %c0_i32, %c0_i32_0 : i32, i32
  }
  func.func @transform_2(%arg0: i32) -> (i32, i32) {
    %c0_i32 = arith.constant 0 : i32
    %c0_i32_0 = arith.constant 0 : i32
    %c0_i32_1 = arith.constant 0 : i32
    return %c0_i32, %c0_i32_0 : i32, i32
  }
  func.func @transform_3(%arg0: i32) -> (i32, i32) {
    %c0_i32 = arith.constant 0 : i32
    %c0_i32_0 = arith.constant 0 : i32
    %c0_i32_1 = arith.constant 0 : i32
    return %c0_i32, %c0_i32_0 : i32, i32
  }
  func.func @transform_4(%arg0: i32) -> (i32, i32) {
    %c0_i32 = arith.constant 0 : i32
    %c0_i32_0 = arith.constant 0 : i32
    %c0_i32_1 = arith.constant 0 : i32
    return %c0_i32, %c0_i32_0 : i32, i32
  }
}

</mosaic_0001>

<bundles_post_ra>
// kernel: tpu_custom_call.1
= control target key start
LH: loop header
LB: loop body
LE: loop exit
PB: predicated region body
PF: predicated region fallthrough
CT: control target
= control target key end

     0   :  { %v1209_v3 = vmov 0.0|0.0   ;;  %s2013_s0 = inlined_call_operand.vmem [shape: f32[256,288], index: 0, kind: input, shape index: {}]   ;;  %s2014_s1 = inlined_call_operand.vmem [shape: f32[288,128], index: 1, kind: input, shape index: {}]   ;;  %s2015_s2 = inlined_call_operand.vmem [shape: f32[1,128], index: 2, kind: input, shape index: {}]   ;;  %s2016_s3 = inlined_call_operand.vmem [shape: f32[1,128], index: 3, kind: input, shape index: {}]   ;;  %s2017_s4 = inlined_call_operand.hbm [shape: f32[256,128], index: 4, kind: output, shape index: {}]  }
   0x1   :  { %v114_v0 = vld [vmem:[%s2014_s1] sm:$0xff]  ;;  %v115_v1 = vld [vmem:[%s2014_s1 + $0x8] sm:$0xff]  ;;  %v116_v2 = vld [vmem:[%s2014_s1 + $0x10] sm:$0xff]  ;;  %1091 = vmatprep.subr.bf16.mxu0 %v1209_v3  ;;  %1147 = vmatprep.subr.bf16.mxu1 %v1209_v3 }
   0x2   :  { %v1092_v4 = vpack.c.bf16 %v115_v1, %v114_v0  ;;  %v117_v5 = vld [vmem:[%s2014_s1 + $0x18] sm:$0xff]  ;;  %v118_v7 = vld [vmem:[%s2014_s1 + $0x20] sm:$0xff]  ;;  %v119_v8 = vld [vmem:[%s2014_s1 + $0x28] sm:$0xff] }
   0x3   :  { %v1095_v6 = vpack.c.bf16 %v117_v5, %v116_v2  ;;  %v1098_v9 = vpack.c.bf16 %v119_v8, %v118_v7  ;;  %v120_v10 = vld [vmem:[%s2014_s1 + $0x30] sm:$0xff]  ;;  %v121_v11 = vld [vmem:[%s2014_s1 + $0x38] sm:$0xff]  ;;  %v19_v12 = vld [vmem:[%s2013_s0 + $0x8] sm:$0xff] }
   0x4   :  { %1093 = vmatpush1.bf16.msra.mxu0 %v1092_v4  ;;  %1163 = vmatpush1.bf16.msra.mxu1 %v1092_v4  ;;  %v1101_v13 = vpack.c.bf16 %v121_v11, %v120_v10  ;;  %v91_v14 = vld [vmem:[%s2013_s0 + $0x248] sm:$0xff]  ;;  %v122_v15 = vld [vmem:[%s2014_s1 + $0x40] sm:$0xff]  ;;  %v124_v18 = vld [vmem:[%s2014_s1 + $0x50] sm:$0xff] }
   0x5   :  { %1094 = vmatprep.subr.bf16.mxu0 %v1209_v3  ;;  %1148 = vmatprep.subr.bf16.mxu1 %v1209_v3  ;;  %v123_v16 = vld [vmem:[%s2014_s1 + $0x48] sm:$0xff]  ;;  %v125_v19 = vld [vmem:[%s2014_s1 + $0x58] sm:$0xff]  ;;  %v126_v21 = vld [vmem:[%s2014_s1 + $0x60] sm:$0xff] }
   0x6   :  { %311 = vmatprep.mubr.f32.mxu0 %v19_v12  ;;  %431 = vmatprep.mubr.f32.mxu1 %v91_v14  ;;  %v1104_v17 = vpack.c.bf16 %v123_v16, %v122_v15  ;;  %v1107_v20 = vpack.c.bf16 %v125_v19, %v124_v18  ;;  %v127_v22 = vld [vmem:[%s2014_s1 + $0x68] sm:$0xff]  ;;  %v128_v24 = vld [vmem:[%s2014_s1 + $0x70] sm:$0xff]  ;;  %v129_v25 = vld [vmem:[%s2014_s1 + $0x78] sm:$0xff] }
   0x7   :  { %v1110_v23 = vpack.c.bf16 %v127_v22, %v126_v21  ;;  %v1113_v26 = vpack.c.bf16 %v129_v25, %v128_v24  ;;  %v130_v27 = vld [vmem:[%s2014_s1 + $0x80] sm:$0xff]  ;;  %v131_v28 = vld [vmem:[%s2014_s1 + $0x88] sm:$0xff]  ;;  %v132_v30 = vld [vmem:[%s2014_s1 + $0x90] sm:$0xff] }
   0x8   :  { %1096 = vmatpush1.bf16.msra.mxu0 %v1095_v6  ;;  %1164 = vmatpush1.bf16.msra.mxu1 %v1095_v6  ;;  %v1116_v29 = vpack.c.bf16 %v131_v28, %v130_v27  ;;  %v133_v31 = vld [vmem:[%s2014_s1 + $0x98] sm:$0xff]  ;;  %v134_v33 = vld [vmem:[%s2014_s1 + $0xa0] sm:$0xff]  ;;  %v135_v34 = vld [vmem:[%s2014_s1 + $0xa8] sm:$0xff] }
   0x9   :  { %1097 = vmatprep.subr.bf16.mxu0 %v1209_v3  ;;  %1149 = vmatprep.subr.bf16.mxu1 %v1209_v3  ;;  %v1119_v32 = vpack.c.bf16 %v133_v31, %v132_v30  ;;  %v1122_v35 = vpack.c.bf16 %v135_v34, %v134_v33  ;;  %v136_v36 = vld [vmem:[%s2014_s1 + $0xb0] sm:$0xff]  ;;  %v137_v37 = vld [vmem:[%s2014_s1 + $0xb8] sm:$0xff]  ;;  %v138_v39 = vld [vmem:[%s2014_s1 + $0xc0] sm:$0xff] }
   0xa   :  { %v1125_v38 = vpack.c.bf16 %v137_v37, %v136_v36  ;;  %v139_v40 = vld [vmem:[%s2014_s1 + $0xc8] sm:$0xff] }
   0xc   :  { %1099 = vmatpush1.bf16.msra.mxu0 %v1098_v9  ;;  %1165 = vmatpush1.bf16.msra.mxu1 %v1098_v9 }
   0xd   :  { %1100 = vmatprep.subr.bf16.mxu0 %v1209_v3  ;;  %1150 = vmatprep.subr.bf16.mxu1 %v1209_v3 }
  0x10   :  { %1102 = vmatpush1.bf16.msra.mxu0 %v1101_v13  ;;  %1166 = vmatpush1.bf16.msra.mxu1 %v1101_v13 }
  0x11   :  { %1103 = vmatprep.subr.bf16.mxu0 %v1209_v3  ;;  %1151 = vmatprep.subr.bf16.mxu1 %v1209_v3 }
  0x14   :  { %1105 = vmatpush1.bf16.msra.mxu0 %v1104_v17  ;;  %1167 = vmatpush1.bf16.msra.mxu1 %v1104_v17 }
  0x15   :  { %1106 = vmatprep.subr.bf16.mxu0 %v1209_v3  ;;  %1152 = vmatprep.subr.bf16.mxu1 %v1209_v3 }
  0x18   :  { %1108 = vmatpush1.bf16.msra.mxu0 %v1107_v20  ;;  %1168 = vmatpush1.bf16.msra.mxu1 %v1107_v20 }
  0x19   :  { %1109 = vmatprep.subr.bf16.mxu0 %v1209_v3  ;;  %1153 = vmatprep.subr.bf16.mxu1 %v1209_v3 }
  0x1c   :  { %1111 = vmatpush1.bf16.msra.mxu0 %v1110_v23  ;;  %1169 = vmatpush1.bf16.msra.mxu1 %v1110_v23 }
  0x1d   :  { %1112 = vmatprep.subr.bf16.mxu0 %v1209_v3  ;;  %1154 = vmatprep.subr.bf16.mxu1 %v1209_v3 }
  0x20   :  { %1114 = vmatpush1.bf16.msra.mxu0 %v1113_v26  ;;  %1170 = vmatpush1.bf16.msra.mxu1 %v1113_v26 }
  0x21   :  { %1115 = vmatprep.subr.bf16.mxu0 %v1209_v3  ;;  %1155 = vmatprep.subr.bf16.mxu1 %v1209_v3 }
  0x24   :  { %1117 = vmatpush1.bf16.msra.mxu0 %v1116_v29  ;;  %1171 = vmatpush1.bf16.msra.mxu1 %v1116_v29 }
  0x25   :  { %1118 = vmatprep.subr.bf16.mxu0 %v1209_v3  ;;  %1156 = vmatprep.subr.bf16.mxu1 %v1209_v3 }
  0x28   :  { %1120 = vmatpush1.bf16.msra.mxu0 %v1119_v32  ;;  %1172 = vmatpush1.bf16.msra.mxu1 %v1119_v32 }
  0x29   :  { %1121 = vmatprep.subr.bf16.mxu0 %v1209_v3  ;;  %1157 = vmatprep.subr.bf16.mxu1 %v1209_v3 }
  0x2c   :  { %1123 = vmatpush1.bf16.msra.mxu0 %v1122_v35  ;;  %1173 = vmatpush1.bf16.msra.mxu1 %v1122_v35 }
  0x2d   :  { %1124 = vmatprep.subr.bf16.mxu0 %v1209_v3  ;;  %1158 = vmatprep.subr.bf16.mxu1 %v1209_v3 }
  0x2e   :  { %9 = vsyncpa [#allocation3], 0  ;;  %v1128_v41 = vpack.c.bf16 %v139_v40, %v138_v39  ;;  %v140_v42 = vld [vmem:[%s2014_s1 + $0xd0] sm:$0xff]  ;;  %v141_v43 = vld [vmem:[%s2014_s1 + $0xd8] sm:$0xff]  ;;  %vm150_vm0 = vcmask 261120  }
  0x2f   :  { %v1131_v44 = vpack.c.bf16 %v141_v43, %v140_v42  ;;  %v142_v45 = vld [vmem:[%s2014_s1 + $0xe0] sm:$0xff]  ;;  %v143_v46 = vld [vmem:[%s2014_s1 + $0xe8] sm:$0xff]  ;;  %v144_v48 = vld [vmem:[%s2014_s1 + $0xf0] sm:$0xff] }
  0x30   :  { %1126 = vmatpush1.bf16.msra.mxu0 %v1125_v38  ;;  %1174 = vmatpush1.bf16.msra.mxu1 %v1125_v38  ;;  %v1134_v47 = vpack.c.bf16 %v143_v46, %v142_v45  ;;  %v145_v49 = vld [vmem:[%s2014_s1 + $0xf8] sm:$0xff]  ;;  %v146_v50 = vld [vmem:[%s2014_s1 + $0x100] sm:$0xff]  ;;  %v147_v51 = vld [vmem:[%s2014_s1 + $0x108] sm:$0xff] }
  0x31   :  { %1127 = vmatprep.subr.bf16.mxu0 %v1209_v3  ;;  %1159 = vmatprep.subr.bf16.mxu1 %v1209_v3  ;;  %v1137_v52 = vpack.c.bf16 %v145_v49, %v144_v48  ;;  %v1139_v53 = vpack.c.bf16 %v147_v51, %v146_v50  ;;  %v148_v54 = vld [vmem:[%s2014_s1 + $0x110] sm:$0xff]  ;;  %v149_v55 = vld [vmem:[%s2014_s1 + $0x118] sm:$0xff]  ;;  %v18_v56 = vld [vmem:[%s2013_s0] sm:$0xff] }
  0x32   :  { %v90_v57 = vld [vmem:[%s2013_s0 + $0x240] sm:$0xff]  ;;  %v1143_v60 = vpack.c.bf16 %v149_v55, %v148_v54  ;;  %v21_v61 = vld [vmem:[%s2013_s0 + $0x18] sm:$0xff]  ;;  %v24_v1 = vld [vmem:[%s2013_s0 + $0x30] sm:$0xff] }
  0x33   :  { %v22_v58 = vld [vmem:[%s2013_s0 + $0x20] sm:$0xff]  ;;  %v93_v62 = vld [vmem:[%s2013_s0 + $0x258] sm:$0xff]  ;;  %v96_v2 = vld [vmem:[%s2013_s0 + $0x270] sm:$0xff] }
  0x34   :  { %1129 = vmatpush1.bf16.msra.mxu0 %v1128_v41  ;;  %1175 = vmatpush1.bf16.msra.mxu1 %v1128_v41  ;;  %v94_v59 = vld [vmem:[%s2013_s0 + $0x260] sm:$0xff]  ;;  %v25_v63 = vld [vmem:[%s2013_s0 + $0x38] sm:$0xff]  ;;  %v100_v4 = vld [vmem:[%s2013_s0 + $0x290] sm:$0xff] }
  0x35   :  { %1130 = vmatprep.subr.bf16.mxu0 %v1209_v3  ;;  %1160 = vmatprep.subr.bf16.mxu1 %v1209_v3  ;;  %v97_v0 = vld [vmem:[%s2013_s0 + $0x278] sm:$0xff]  ;;  %v27_v5 = vld [vmem:[%s2013_s0 + $0x48] sm:$0xff]  ;;  %v30_v9 = vld [vmem:[%s2013_s0 + $0x60] sm:$0xff] }
  0x36   :  { %v99_v6 = vld [vmem:[%s2013_s0 + $0x288] sm:$0xff]  ;;  %v102_v10 = vld [vmem:[%s2013_s0 + $0x2a0] sm:$0xff]  ;;  %v33_v13 = vld [vmem:[%s2013_s0 + $0x78] sm:$0xff] }
  0x37   :  { %v31_v7 = vld [vmem:[%s2013_s0 + $0x68] sm:$0xff]  ;;  %v34_v11 = vld [vmem:[%s2013_s0 + $0x80] sm:$0xff]  ;;  %v105_v14 = vld [vmem:[%s2013_s0 + $0x2b8] sm:$0xff] }
  0x38   :  { %1132 = vmatpush1.bf16.msra.mxu0 %v1131_v44  ;;  %1176 = vmatpush1.bf16.msra.mxu1 %v1131_v44  ;;  %v103_v8 = vld [vmem:[%s2013_s0 + $0x2a8] sm:$0xff]  ;;  %v106_v12 = vld [vmem:[%s2013_s0 + $0x2c0] sm:$0xff]  ;;  %v37_v15 = vld [vmem:[%s2013_s0 + $0x98] sm:$0xff] }
  0x39   :  { %1133 = vmatprep.subr.bf16.mxu0 %v1209_v3  ;;  %1161 = vmatprep.subr.bf16.mxu1 %v1209_v3  ;;  %v109_v16 = vld [vmem:[%s2013_s0 + $0x2d8] sm:$0xff]  ;;  %v36_v17 = vld [vmem:[%s2013_s0 + $0x90] sm:$0xff]  ;;  %v39_v21 = vld [vmem:[%s2013_s0 + $0xa8] sm:$0xff] }
  0x3a   :  { %v108_v18 = vld [vmem:[%s2013_s0 + $0x2d0] sm:$0xff]  ;;  %v111_v22 = vld [vmem:[%s2013_s0 + $0x2e8] sm:$0xff]  ;;  %v42_v25 = vld [vmem:[%s2013_s0 + $0xc0] sm:$0xff] }
  0x3b   :  { %v40_v19 = vld [vmem:[%s2013_s0 + $0xb0] sm:$0xff]  ;;  %v43_v23 = vld [vmem:[%s2013_s0 + $0xc8] sm:$0xff]  ;;  %v46_v27 = vld [vmem:[%s2013_s0 + $0xe0] sm:$0xff] }
  0x3c   :  { %1135 = vmatpush1.bf16.msra.mxu0 %v1134_v47  ;;  %1177 = vmatpush1.bf16.msra.mxu1 %v1134_v47  ;;  %v112_v20 = vld [vmem:[%s2013_s0 + $0x2f0] sm:$0xff]  ;;  %v23_v26 = vld [vmem:[%s2013_s0 + $0x28] sm:$0xff]  ;;  %v26_v28 = vld [vmem:[%s2013_s0 + $0x40] sm:$0xff] }
  0x3d   :  { %1136 = vmatprep.subr.bf16.mxu0 %v1209_v3  ;;  %1162 = vmatprep.subr.bf16.mxu1 %v1209_v3  ;;  %v28_v3 = vld [vmem:[%s2013_s0 + $0x50] sm:$0xff]  ;;  %v45_v29 = vld [vmem:[%s2013_s0 + $0xd8] sm:$0xff]  ;;  %v35_v34 = vld [vmem:[%s2013_s0 + $0x88] sm:$0xff] }
  0x3e   :  { %v20_v24 = vld [vmem:[%s2013_s0 + $0x10] sm:$0xff]  ;;  %v29_v30 = vld [vmem:[%s2013_s0 + $0x58] sm:$0xff]  ;;  %v38_v36 = vld [vmem:[%s2013_s0 + $0xa0] sm:$0xff] }
  0x3f   :  { %v49_v31 = vld [vmem:[%s2013_s0 + $0xf8] sm:$0xff]  ;;  %v32_v32 = vld [vmem:[%s2013_s0 + $0x70] sm:$0xff]  ;;  %v51_v37 = vld [vmem:[%s2013_s0 + $0x108] sm:$0xff] }
  0x40   :  { %1138 = vmatpush1.bf16.msra.mxu0 %v1137_v52  ;;  %1178 = vmatpush1.bf16.msra.mxu1 %v1137_v52  ;;  %v48_v33 = vld [vmem:[%s2013_s0 + $0xf0] sm:$0xff]  ;;  %v41_v38 = vld [vmem:[%s2013_s0 + $0xb8] sm:$0xff]  ;;  %v55_v39 = vld [vmem:[%s2013_s0 + $0x128] sm:$0xff] }
  0x41   :  { %1140 = vmatprep.subr.bf16.mxu1 %v1139_v53  ;;  %v52_v35 = vld [vmem:[%s2013_s0 + $0x110] sm:$0xff]  ;;  %v54_v41 = vld [vmem:[%s2013_s0 + $0x120] sm:$0xff]  ;;  %v47_v42 = vld [vmem:[%s2013_s0 + $0xe8] sm:$0xff] }
  0x42   :  { %v44_v40 = vld [vmem:[%s2013_s0 + $0xd0] sm:$0xff]  ;;  %v58_v43 = vld [vmem:[%s2013_s0 + $0x140] sm:$0xff]  ;;  %v57_v45 = vld [vmem:[%s2013_s0 + $0x138] sm:$0xff] }
  0x43   :  { %312 = vmatmul.mubr.f32.vlgmr.msra.gmra.mrb[0].mxu0 %v18_v56  ;;  %432 = vmatmul.mubr.f32.vlgmr.msra.gmra.mrb[0].mxu1 %v90_v57  ;;  %v50_v44 = vld [vmem:[%s2013_s0 + $0x100] sm:$0xff]  ;;  %v53_v46 = vld [vmem:[%s2013_s0 + $0x118] sm:$0xff]  ;;  %v56_v48 = vld [vmem:[%s2013_s0 + $0x130] sm:$0xff] }
  0x44   :  { %316 = vmatprep.mubr.f32.mxu0 %v22_v58  ;;  %436 = vmatprep.mubr.f32.mxu1 %v94_v59  ;;  %v61_v47 = vld [vmem:[%s2013_s0 + $0x158] sm:$0xff]  ;;  %v60_v49 = vld [vmem:[%s2013_s0 + $0x150] sm:$0xff]  ;;  %v59_v50 = vld [vmem:[%s2013_s0 + $0x148] sm:$0xff] }
  0x45   :  { %1142 = vmatpush3.bf16.msra.mxu1 %v1139_v53  ;;  %v64_v51 = vld [vmem:[%s2013_s0 + $0x170] sm:$0xff]  ;;  %v62_v52 = vld [vmem:[%s2013_s0 + $0x160] sm:$0xff]  ;;  %v63_v53 = vld [vmem:[%s2013_s0 + $0x168] sm:$0xff] }
  0x46   :  { %1144 = vmatprep.subr.bf16.mxu1 %v1143_v60  ;;  %v65_v54 = vld [vmem:[%s2013_s0 + $0x178] sm:$0xff]  ;;  %v67_v55 = vld [vmem:[%s2013_s0 + $0x188] sm:$0xff]  ;;  %v68_v56 = vld [vmem:[%s2013_s0 + $0x190] sm:$0xff] }
  0x47   :  { %317 = vmatmul.mubr.f32.gmra.mrb[2].mxu0 %v21_v61  ;;  %437 = vmatmul.mubr.f32.gmra.mrb[2].mxu1 %v93_v62  ;;  %v66_v57 = vld [vmem:[%s2013_s0 + $0x180] sm:$0xff]  ;;  %v71_v58 = vld [vmem:[%s2013_s0 + $0x1a8] sm:$0xff]  ;;  %v69_v61 = vld [vmem:[%s2013_s0 + $0x198] sm:$0xff] }
  0x48   :  { %321 = vmatprep.mubr.f32.mxu0 %v25_v63  ;;  %441 = vmatprep.mubr.f32.mxu1 %v97_v0  ;;  %v70_v59 = vld [vmem:[%s2013_s0 + $0x1a0] sm:$0xff]  ;;  %v77_v62 = vld [vmem:[%s2013_s0 + $0x1d8] sm:$0xff]  ;;  %v80_v0 = vld [vmem:[%s2013_s0 + $0x1f0] sm:$0xff] }
  0x49   :  { %1146 = vmatpush3.bf16.msra.mxu1 %v1143_v60  ;;  %v74_v60 = vld [vmem:[%s2013_s0 + $0x1c0] sm:$0xff]  ;;  %v73_v63 = vld [vmem:[%s2013_s0 + $0x1b8] sm:$0xff] }
  0x4b   :  { %322 = vmatmul.mubr.f32.gmra.mrb[4].mxu0 %v24_v1  ;;  %442 = vmatmul.mubr.f32.gmra.mrb[4].mxu1 %v96_v2  ;;  %v72_v1 = vld [vmem:[%s2013_s0 + $0x1b0] sm:$0xff]  ;;  %v83_v2 = vld [vmem:[%s2013_s0 + $0x208] sm:$0xff] }
  0x4c   :  { %326 = vmatprep.mubr.f32.mxu0 %v28_v3  ;;  %446 = vmatprep.mubr.f32.mxu1 %v100_v4  ;;  %v76_v3 = vld [vmem:[%s2013_s0 + $0x1d0] sm:$0xff]  ;;  %v86_v4 = vld [vmem:[%s2013_s0 + $0x220] sm:$0xff] }
  0x4f   :  { %327 = vmatmul.mubr.f32.gmra.mrb[6].mxu0 %v27_v5  ;;  %447 = vmatmul.mubr.f32.gmra.mrb[6].mxu1 %v99_v6  ;;  %v75_v5 = vld [vmem:[%s2013_s0 + $0x1c8] sm:$0xff]  ;;  %v89_v6 = vld [vmem:[%s2013_s0 + $0x238] sm:$0xff] }
  0x50   :  { %331 = vmatprep.mubr.f32.mxu0 %v31_v7  ;;  %451 = vmatprep.mubr.f32.mxu1 %v103_v8  ;;  %v79_v7 = vld [vmem:[%s2013_s0 + $0x1e8] sm:$0xff]  ;;  %v92_v8 = vld [vmem:[%s2013_s0 + $0x250] sm:$0xff] }
  0x53   :  { %332 = vmatmul.mubr.f32.gmra.mrb[8].mxu0 %v30_v9  ;;  %452 = vmatmul.mubr.f32.gmra.mrb[8].mxu1 %v102_v10  ;;  %v78_v9 = vld [vmem:[%s2013_s0 + $0x1e0] sm:$0xff]  ;;  %v95_v10 = vld [vmem:[%s2013_s0 + $0x268] sm:$0xff] }
  0x54   :  { %336 = vmatprep.mubr.f32.mxu0 %v34_v11  ;;  %456 = vmatprep.mubr.f32.mxu1 %v106_v12  ;;  %v82_v11 = vld [vmem:[%s2013_s0 + $0x200] sm:$0xff] }
  0x55   :  { %v98_v12 = vld [vmem:[%s2013_s0 + $0x280] sm:$0xff] }
  0x57   :  { %337 = vmatmul.mubr.f32.gmra.mrb[10].mxu0 %v33_v13  ;;  %457 = vmatmul.mubr.f32.gmra.mrb[10].mxu1 %v105_v14  ;;  %v81_v13 = vld [vmem:[%s2013_s0 + $0x1f8] sm:$0xff] }
  0x58   :  { %341 = vmatprep.mubr.f32.mxu0 %v37_v15  ;;  %461 = vmatprep.mubr.f32.mxu1 %v109_v16  ;;  %v101_v14 = vld [vmem:[%s2013_s0 + $0x298] sm:$0xff]  ;;  %v104_v16 = vld [vmem:[%s2013_s0 + $0x2b0] sm:$0xff] }
  0x59   :  { %v85_v15 = vld [vmem:[%s2013_s0 + $0x218] sm:$0xff] }
  0x5b   :  { %342 = vmatmul.mubr.f32.gmra.mrb[12].mxu0 %v36_v17  ;;  %462 = vmatmul.mubr.f32.gmra.mrb[12].mxu1 %v108_v18  ;;  %v84_v17 = vld [vmem:[%s2013_s0 + $0x210] sm:$0xff]  ;;  %v107_v18 = vld [vmem:[%s2013_s0 + $0x2c8] sm:$0xff] }
  0x5c   :  { %346 = vmatprep.mubr.f32.mxu0 %v40_v19  ;;  %466 = vmatprep.mubr.f32.mxu1 %v112_v20  ;;  %v88_v19 = vld [vmem:[%s2013_s0 + $0x230] sm:$0xff]  ;;  %v110_v20 = vld [vmem:[%s2013_s0 + $0x2e0] sm:$0xff] }
  0x5f   :  { %347 = vmatmul.mubr.f32.gmra.mrb[14].mxu0 %v39_v21  ;;  %467 = vmatmul.mubr.f32.gmra.mrb[14].mxu1 %v111_v22  ;;  %v87_v21 = vld [vmem:[%s2013_s0 + $0x228] sm:$0xff]  ;;  %v113_v22 = vld [vmem:[%s2013_s0 + $0x2f8] sm:$0xff] }
  0x60   :  { %351 = vmatprep.mubr.f32.mxu0 %v43_v23  ;;  %1043 = vmatprep.mubr.msk.f32.mxu1 %vm150_vm0, %v20_v24 }
  0x63   :  { %352 = vmatmul.mubr.f32.gmra.mrb[16].mxu0 %v42_v25  ;;  %1044 = vmatmul.mubr.msk.f32.vlgmr.msra.gmra.mrb[16].mxu1 %vm150_vm0, %v23_v26 }
  0x64   :  { %356 = vmatprep.mubr.f32.mxu0 %v46_v27  ;;  %1046 = vmatprep.mubr.msk.f32.mxu1 %vm150_vm0, %v26_v28 }
  0x67   :  { %357 = vmatmul.mubr.f32.gmra.mrb[18].mxu0 %v45_v29  ;;  %1047 = vmatmul.mubr.msk.f32.gmra.mrb[18].mxu1 %vm150_vm0, %v29_v30 }
  0x68   :  { %361 = vmatprep.mubr.f32.mxu0 %v49_v31  ;;  %1049 = vmatprep.mubr.msk.f32.mxu1 %vm150_vm0, %v32_v32 }
  0x6b   :  { %362 = vmatmul.mubr.f32.gmra.mrb[20].mxu0 %v48_v33  ;;  %1050 = vmatmul.mubr.msk.f32.gmra.mrb[20].mxu1 %vm150_vm0, %v35_v34 }
  0x6c   :  { %366 = vmatprep.mubr.f32.mxu0 %v52_v35  ;;  %1052 = vmatprep.mubr.msk.f32.mxu1 %vm150_vm0, %v38_v36 }
  0x6f   :  { %367 = vmatmul.mubr.f32.gmra.mrb[22].mxu0 %v51_v37  ;;  %1053 = vmatmul.mubr.msk.f32.gmra.mrb[22].mxu1 %vm150_vm0, %v41_v38 }
  0x70   :  { %371 = vmatprep.mubr.f32.mxu0 %v55_v39  ;;  %1055 = vmatprep.mubr.msk.f32.mxu1 %vm150_vm0, %v44_v40 }
  0x73   :  { %372 = vmatmul.mubr.f32.gmra.mrb[24].mxu0 %v54_v41  ;;  %1056 = vmatmul.mubr.msk.f32.gmra.mrb[24].mxu1 %vm150_vm0, %v47_v42 }
  0x74   :  { %376 = vmatprep.mubr.f32.mxu0 %v58_v43  ;;  %1058 = vmatprep.mubr.msk.f32.mxu1 %vm150_vm0, %v50_v44 }
  0x77   :  { %377 = vmatmul.mubr.f32.gmra.mrb[26].mxu0 %v57_v45  ;;  %1059 = vmatmul.mubr.msk.f32.gmra.mrb[26].mxu1 %vm150_vm0, %v53_v46 }
  0x78   :  { %381 = vmatprep.mubr.f32.mxu0 %v61_v47  ;;  %1061 = vmatprep.mubr.msk.f32.mxu1 %vm150_vm0, %v56_v48 }
  0x7b   :  { %382 = vmatmul.mubr.f32.gmra.mrb[28].mxu0 %v60_v49  ;;  %1062 = vmatmul.mubr.msk.f32.gmra.mrb[28].mxu1 %vm150_vm0, %v59_v50 }
  0x7c   :  { %386 = vmatprep.mubr.f32.mxu0 %v64_v51  ;;  %1064 = vmatprep.mubr.msk.f32.mxu1 %vm150_vm0, %v62_v52 }
  0x7f   :  { %387 = vmatmul.mubr.f32.gmra.mrb[30].mxu0 %v63_v53  ;;  %1065 = vmatmul.mubr.msk.f32.gmra.mrb[30].mxu1 %vm150_vm0, %v65_v54 }
  0x80   :  { %391 = vmatprep.mubr.f32.mxu0 %v67_v55  ;;  %1067 = vmatprep.mubr.msk.f32.mxu1 %vm150_vm0, %v68_v56 }
  0x83   :  { %392 = vmatmul.mubr.f32.gmra.mrb[32].mxu0 %v66_v57  ;;  %1068 = vmatmul.mubr.msk.f32.gmra.mrb[32].mxu1 %vm150_vm0, %v71_v58 }
  0x84   :  { %396 = vmatprep.mubr.f32.mxu0 %v70_v59  ;;  %1070 = vmatprep.mubr.msk.f32.mxu1 %vm150_vm0, %v74_v60 }
  0x87   :  { %397 = vmatmul.mubr.f32.gmra.mrb[34].mxu0 %v69_v61  ;;  %1071 = vmatmul.mubr.msk.f32.gmra.mrb[34].mxu1 %vm150_vm0, %v77_v62 }
  0x88   :  { %401 = vmatprep.mubr.f32.mxu0 %v73_v63  ;;  %1073 = vmatprep.mubr.msk.f32.mxu1 %vm150_vm0, %v80_v0 }
  0x8b   :  { %402 = vmatmul.mubr.f32.gmra.mrb[36].mxu0 %v72_v1  ;;  %1074 = vmatmul.mubr.msk.f32.gmra.mrb[36].mxu1 %vm150_vm0, %v83_v2 }
  0x8c   :  { %406 = vmatprep.mubr.f32.mxu0 %v76_v3  ;;  %1076 = vmatprep.mubr.msk.f32.mxu1 %vm150_vm0, %v86_v4 }
  0x8f   :  { %407 = vmatmul.mubr.f32.gmra.mrb[38].mxu0 %v75_v5  ;;  %1077 = vmatmul.mubr.msk.f32.gmra.mrb[38].mxu1 %vm150_vm0, %v89_v6 }
  0x90   :  { %411 = vmatprep.mubr.f32.mxu0 %v79_v7  ;;  %1079 = vmatprep.mubr.msk.f32.mxu1 %vm150_vm0, %v92_v8 }
  0x93   :  { %412 = vmatmul.mubr.f32.gmra.mrb[40].mxu0 %v78_v9  ;;  %1080 = vmatmul.mubr.msk.f32.gmra.mrb[40].mxu1 %vm150_vm0, %v95_v10 }
  0x94   :  { %416 = vmatprep.mubr.f32.mxu0 %v82_v11  ;;  %1082 = vmatprep.mubr.msk.f32.mxu1 %vm150_vm0, %v98_v12 }
  0x97   :  { %417 = vmatmul.mubr.f32.gmra.mrb[42].mxu0 %v81_v13  ;;  %1083 = vmatmul.mubr.msk.f32.gmra.mrb[42].mxu1 %vm150_vm0, %v101_v14 }
  0x98   :  { %421 = vmatprep.mubr.f32.mxu0 %v85_v15  ;;  %1085 = vmatprep.mubr.msk.f32.mxu1 %vm150_vm0, %v104_v16 }
  0x9b   :  { %422 = vmatmul.mubr.f32.gmra.mrb[44].mxu0 %v84_v17  ;;  %1086 = vmatmul.mubr.msk.f32.gmra.mrb[44].mxu1 %vm150_vm0, %v107_v18 }
  0x9c   :  { %426 = vmatprep.mubr.f32.mxu0 %v88_v19  ;;  %1088 = vmatprep.mubr.msk.f32.mxu1 %vm150_vm0, %v110_v20 }
  0x9f   :  { %427 = vmatmul.mubr.f32.gmra.mrb[46].mxu0 %v87_v21  ;;  %1089 = vmatmul.mubr.msk.f32.gmra.mrb[46].mxu1 %vm150_vm0, %v113_v22 }
 0x116   :  { %v313_v23 = vpop.f32.mrb[0].mxu0  ;;  %v1698_v24 = vpop.f32.mrb[0].mxu1 }
 0x117   :  { %v315_v25 = vpop.f32.mrb[1].mxu0  ;;  %v435_v26 = vpop.f32.mrb[1].mxu1 }
 0x11a   :  { %v318_v27 = vpop.f32.mrb[2].mxu0  ;;  %v1700_v28 = vpop.f32.mrb[2].mxu1 }
 0x11b   :  { %v320_v29 = vpop.f32.mrb[3].mxu0  ;;  %v440_v30 = vpop.f32.mrb[3].mxu1 }
 0x11e   :  { %v323_v31 = vpop.f32.mrb[4].mxu0  ;;  %v1702_v32 = vpop.f32.mrb[4].mxu1 }
 0x11f   :  { %v325_v33 = vpop.f32.mrb[5].mxu0  ;;  %v445_v34 = vpop.f32.mrb[5].mxu1 }
 0x122   :  { %v328_v35 = vpop.f32.mrb[6].mxu0  ;;  %v1704_v36 = vpop.f32.mrb[6].mxu1 }
 0x123   :  { %v330_v37 = vpop.f32.mrb[7].mxu0  ;;  %v450_v38 = vpop.f32.mrb[7].mxu1 }
 0x126   :  { %v333_v39 = vpop.f32.mrb[8].mxu0  ;;  %v1706_v40 = vpop.f32.mrb[8].mxu1 }
 0x127   :  { %v335_v41 = vpop.f32.mrb[9].mxu0  ;;  %v455_v42 = vpop.f32.mrb[9].mxu1 }
 0x12a   :  { %v338_v43 = vpop.f32.mrb[10].mxu0  ;;  %v1708_v44 = vpop.f32.mrb[10].mxu1 }
 0x12b   :  { %v340_v45 = vpop.f32.mrb[11].mxu0  ;;  %v460_v46 = vpop.f32.mrb[11].mxu1 }
 0x12e   :  { %v343_v47 = vpop.f32.mrb[12].mxu0  ;;  %v1710_v48 = vpop.f32.mrb[12].mxu1 }
 0x12f   :  { %v345_v49 = vpop.f32.mrb[13].mxu0  ;;  %v465_v50 = vpop.f32.mrb[13].mxu1 }
 0x132   :  { %v348_v51 = vpop.f32.mrb[14].mxu0  ;;  %v1712_v52 = vpop.f32.mrb[14].mxu1 }
 0x133   :  { %v350_v53 = vpop.f32.mrb[15].mxu0  ;;  %v470_v54 = vpop.f32.mrb[15].mxu1 }
 0x136   :  { %v353_v55 = vpop.f32.mrb[16].mxu0  ;;  %v1045_v56 = vpop.f32.mrb[16].mxu1 }
 0x137   :  { %v1714_v57 = vadd.f32 %v1045_v56, %v318_v27  ;;  %v355_v58 = vpop.f32.mrb[17].mxu0  ;;  %v538_v59 = vpop.f32.mrb[17].mxu1 }
 0x138   :  { %v1716_v60 = vadd.f32 %v538_v59, %v313_v23 }
 0x13a   :  { %v358_v61 = vpop.f32.mrb[18].mxu0  ;;  %v1048_v62 = vpop.f32.mrb[18].mxu1  ;;  %v697_v2 = vadd.f32 %v1714_v57, %v1716_v60 }
 0x13b   :  { %v1718_v63 = vadd.f32 %v1048_v62, %v328_v35  ;;  %v360_v0 = vpop.f32.mrb[19].mxu0  ;;  %v548_v1 = vpop.f32.mrb[19].mxu1 }
 0x13c   :  { %v1722_v3 = vadd.f32 %v548_v1, %v323_v31 }
 0x13e   :  { %v698_v4 = vadd.f32 %v697_v2, %v1722_v3  ;;  %v363_v5 = vpop.f32.mrb[20].mxu0  ;;  %v1051_v6 = vpop.f32.mrb[20].mxu1 }
 0x13f   :  { %v1725_v7 = vadd.f32 %v1051_v6, %v338_v43  ;;  %v365_v8 = vpop.f32.mrb[21].mxu0  ;;  %v558_v9 = vpop.f32.mrb[21].mxu1 }
 0x140   :  { %v1727_v10 = vadd.f32 %v558_v9, %v333_v39  ;;  %v699_v11 = vadd.f32 %v698_v4, %v1718_v63 }
 0x142   :  { %v700_v12 = vadd.f32 %v699_v11, %v1727_v10  ;;  %v368_v13 = vpop.f32.mrb[22].mxu0  ;;  %v1054_v14 = vpop.f32.mrb[22].mxu1 }
 0x143   :  { %v1731_v15 = vadd.f32 %v1054_v14, %v348_v51  ;;  %v370_v16 = vpop.f32.mrb[23].mxu0  ;;  %v568_v17 = vpop.f32.mrb[23].mxu1 }
 0x144   :  { %v1733_v18 = vadd.f32 %v568_v17, %v343_v47  ;;  %v701_v19 = vadd.f32 %v700_v12, %v1725_v7 }
 0x146   :  { %v702_v20 = vadd.f32 %v701_v19, %v1733_v18  ;;  %v373_v21 = vpop.f32.mrb[24].mxu0  ;;  %v1057_v22 = vpop.f32.mrb[24].mxu1 }
 0x147   :  { %v1737_v23 = vadd.f32 %v1057_v22, %v358_v61  ;;  %v375_v25 = vpop.f32.mrb[25].mxu0  ;;  %v578_v26 = vpop.f32.mrb[25].mxu1 }
 0x148   :  { %v1739_v27 = vadd.f32 %v578_v26, %v353_v55  ;;  %v703_v29 = vadd.f32 %v702_v20, %v1731_v15 }
 0x14a   :  { %v704_v30 = vadd.f32 %v703_v29, %v1739_v27  ;;  %v378_v31 = vpop.f32.mrb[26].mxu0  ;;  %v1060_v33 = vpop.f32.mrb[26].mxu1 }
 0x14b   :  { %v1743_v34 = vadd.f32 %v1060_v33, %v368_v13  ;;  %v380_v35 = vpop.f32.mrb[27].mxu0  ;;  %v588_v37 = vpop.f32.mrb[27].mxu1 }
 0x14c   :  { %v1745_v38 = vadd.f32 %v588_v37, %v363_v5  ;;  %v705_v39 = vadd.f32 %v704_v30, %v1737_v23 }
 0x14e   :  { %v706_v41 = vadd.f32 %v705_v39, %v1745_v38  ;;  %v383_v42 = vpop.f32.mrb[28].mxu0  ;;  %v1063_v43 = vpop.f32.mrb[28].mxu1 }
 0x14f   :  { %v1749_v45 = vadd.f32 %v1063_v43, %v378_v31  ;;  %v385_v46 = vpop.f32.mrb[29].mxu0  ;;  %v598_v47 = vpop.f32.mrb[29].mxu1 }
 0x150   :  { %v1751_v49 = vadd.f32 %v598_v47, %v373_v21  ;;  %v707_v50 = vadd.f32 %v706_v41, %v1743_v34 }
 0x152   :  { %v708_v51 = vadd.f32 %v707_v50, %v1751_v49  ;;  %v388_v53 = vpop.f32.mrb[30].mxu0  ;;  %v1066_v54 = vpop.f32.mrb[30].mxu1 }
 0x153   :  { %v1755_v55 = vadd.f32 %v1066_v54, %v388_v53  ;;  %v390_v56 = vpop.f32.mrb[31].mxu0  ;;  %v608_v58 = vpop.f32.mrb[31].mxu1 }
 0x154   :  { %v1757_v59 = vadd.f32 %v608_v58, %v383_v42  ;;  %v709_v61 = vadd.f32 %v708_v51, %v1749_v45 }
 0x156   :  { %v710_v62 = vadd.f32 %v709_v61, %v1757_v59  ;;  %v393_v0 = vpop.f32.mrb[32].mxu0  ;;  %v1069_v1 = vpop.f32.mrb[32].mxu1 }
 0x157   :  { %v395_v2 = vpop.f32.mrb[33].mxu0  ;;  %v618_v4 = vpop.f32.mrb[33].mxu1 }
 0x158   :  { %v1761_v5 = vadd.f32 %v618_v4, %v393_v0  ;;  %v711_v6 = vadd.f32 %v710_v62, %v1755_v55 }
 0x15a   :  { %v712_v8 = vadd.f32 %v711_v6, %v1761_v5  ;;  %v398_v9 = vpop.f32.mrb[34].mxu0  ;;  %v1072_v11 = vpop.f32.mrb[34].mxu1 }
 0x15b   :  { %v1765_v12 = vadd.f32 %v1069_v1, %v398_v9  ;;  %v400_v13 = vpop.f32.mrb[35].mxu0  ;;  %v628_v14 = vpop.f32.mrb[35].mxu1 }
 0x15d   :  { %v713_v16 = vadd.f32 %v712_v8, %v1765_v12 }
 0x15e   :  { %v403_v17 = vpop.f32.mrb[36].mxu0  ;;  %v1075_v19 = vpop.f32.mrb[36].mxu1 }
 0x15f   :  { %v629_v20 = vadd.f32 %v628_v14, %v403_v17  ;;  %v405_v21 = vpop.f32.mrb[37].mxu0  ;;  %v638_v22 = vpop.f32.mrb[37].mxu1 }
 0x161   :  { %v714_v25 = vadd.f32 %v713_v16, %v629_v20 }
 0x162   :  { %v408_v26 = vpop.f32.mrb[38].mxu0  ;;  %v1078_v29 = vpop.f32.mrb[38].mxu1 }
 0x163   :  { %v634_v30 = vadd.f32 %v1072_v11, %v408_v26  ;;  %v410_v31 = vpop.f32.mrb[39].mxu0  ;;  %v648_v33 = vpop.f32.mrb[39].mxu1 }
 0x165   :  { %v715_v35 = vadd.f32 %v714_v25, %v634_v30 }
 0x166   :  { %v413_v37 = vpop.f32.mrb[40].mxu0  ;;  %v1081_v39 = vpop.f32.mrb[40].mxu1 }
 0x167   :  { %v639_v41 = vadd.f32 %v638_v22, %v413_v37  ;;  %v664_v42 = vadd.f32 %v1081_v39, %v1700_v28  ;;  %v415_v43 = vpop.f32.mrb[41].mxu0  ;;  %v658_v46 = vpop.f32.mrb[41].mxu1 }
 0x168   :  { %v659_v47 = vadd.f32 %v658_v46, %v1698_v24 }
 0x169   :  { %v716_v50 = vadd.f32 %v715_v35, %v639_v41 }
 0x16a   :  { %v418_v51 = vpop.f32.mrb[42].mxu0  ;;  %v1084_v53 = vpop.f32.mrb[42].mxu1 }
 0x16b   :  { %v644_v54 = vadd.f32 %v1075_v19, %v418_v51  ;;  %v674_v56 = vadd.f32 %v1084_v53, %v1704_v36  ;;  %v420_v58 = vpop.f32.mrb[43].mxu0  ;;  %v668_v61 = vpop.f32.mrb[43].mxu1 }
 0x16c   :  { %v669_v62 = vadd.f32 %v668_v61, %v1702_v32 }
 0x16d   :  { %v717_v0 = vadd.f32 %v716_v50, %v644_v54 }
 0x16e   :  { %v423_v1 = vpop.f32.mrb[44].mxu0  ;;  %v1087_v2 = vpop.f32.mrb[44].mxu1 }
 0x16f   :  { %v649_v4 = vadd.f32 %v648_v33, %v423_v1  ;;  %v684_v28 = vadd.f32 %v1087_v2, %v1708_v44  ;;  %v425_v6 = vpop.f32.mrb[45].mxu0  ;;  %v678_v8 = vpop.f32.mrb[45].mxu1 }
 0x170   :  { %v679_v24 = vadd.f32 %v678_v8, %v1706_v40 }
 0x171   :  { %v718_v9 = vadd.f32 %v717_v0, %v649_v4 }
 0x172   :  { %v428_v11 = vpop.f32.mrb[46].mxu0  ;;  %v1090_v13 = vpop.f32.mrb[46].mxu1 }
 0x173   :  { %v654_v14 = vadd.f32 %v1078_v29, %v428_v11  ;;  %v694_v36 = vadd.f32 %v1090_v13, %v1712_v52  ;;  %v430_v16 = vpop.f32.mrb[47].mxu0  ;;  %v688_v17 = vpop.f32.mrb[47].mxu1 }
 0x174   :  { %v689_v32 = vadd.f32 %v688_v17, %v1710_v48 }
 0x175   :  { %v719_v19 = vadd.f32 %v718_v9, %v654_v14 }
 0x177   :  { %v720_v21 = vadd.f32 %v719_v19, %v659_v47 }
 0x179   :  { %v721_v22 = vadd.f32 %v720_v21, %v664_v42 }
 0x17b   :  { %v722_v25 = vadd.f32 %v721_v22, %v669_v62 }
 0x17d   :  { %v723_v26 = vadd.f32 %v722_v25, %v674_v56 }
 0x17f   :  { %v724_v44 = vadd.f32 %v723_v26, %v679_v24 }
 0x181   :  { %v725_v31 = vadd.f32 %v724_v44, %v684_v28 }
 0x183   :  { %v726_v33 = vadd.f32 %v725_v31, %v689_v32 }
 0x185   :  { %v727_v35 = vadd.f32 %v726_v33, %v694_v36 }
 0x187   :  { %v728_v40 = vrot.slane %v727_v35, 4 }
 0x189   :  { %v729_v37 = vadd.f32 %v728_v40, %v727_v35 }
 0x18b   :  { %v730_v39 = vrot.slane %v729_v37, 2 }
 0x18d   :  { %v731_v43 = vadd.f32 %v730_v39, %v729_v37 }
 0x18f   :  { %v732_v29 = vrot.slane %v731_v43, 1 }
 0x191   :  { %v733_v46 = vadd.f32 %v732_v29, %v731_v43 }
 0x193   :  { %v734_v52 = vmul.f32 0.00390625, %v733_v46 }
 0x195   :  { %v1777_v50 = vsub.f32 %v1755_v55, %v734_v52  ;;  %v1780_v48 = vsub.f32 %v1761_v5, %v734_v52  ;;  %v1783_v51 = vsub.f32 %v1765_v12, %v734_v52  ;;  %v1785_v53 = vsub.f32 %v629_v20, %v734_v52 }
 0x196   :  { %v1787_v58 = vsub.f32 %v634_v30, %v734_v52  ;;  %v1789_v61 = vsub.f32 %v639_v41, %v734_v52  ;;  %v1791_v0 = vsub.f32 %v644_v54, %v734_v52  ;;  %v1793_v1 = vsub.f32 %v649_v4, %v734_v52 }
 0x197   :  { %v1795_v2 = vsub.f32 %v654_v14, %v734_v52  ;;  %v1797_v55 = vsub.f32 %v659_v47, %v734_v52  ;;  %v1799_v6 = vsub.f32 %v664_v42, %v734_v52  ;;  %v1801_v5 = vsub.f32 %v669_v62, %v734_v52 }
 0x198   :  { %v1803_v12 = vsub.f32 %v674_v56, %v734_v52  ;;  %v1805_v20 = vsub.f32 %v679_v24, %v734_v52  ;;  %v1807_v30 = vsub.f32 %v684_v28, %v734_v52  ;;  %v1809_v41 = vsub.f32 %v689_v32, %v734_v52 }
 0x199   :  { %v1811_v54 = vsub.f32 %v694_v36, %v734_v52  ;;  %v1814_v4 = vsub.f32 %v1716_v60, %v734_v52  ;;  %v1817_v47 = vsub.f32 %v1714_v57, %v734_v52  ;;  %v1820_v42 = vsub.f32 %v1722_v3, %v734_v52 }
 0x19a   :  { %v1827_v28 = vsub.f32 %v1718_v63, %v734_v52  ;;  %v1830_v8 = vsub.f32 %v1727_v10, %v734_v52  ;;  %v1835_v24 = vsub.f32 %v1725_v7, %v734_v52  ;;  %v1840_v11 = vsub.f32 %v1733_v18, %v734_v52 }
 0x19b   :  { %v767_v56 = vmul.f32 %v1814_v4, %v1814_v4  ;;  %v768_v62 = vmul.f32 %v1817_v47, %v1817_v47  ;;  %v769_v60 = vmul.f32 %v1820_v42, %v1820_v42  ;;  %v1845_v10 = vsub.f32 %v1731_v15, %v734_v52 }
 0x19c   :  { %v770_v3 = vmul.f32 %v1827_v28, %v1827_v28  ;;  %v771_v63 = vmul.f32 %v1830_v8, %v1830_v8  ;;  %v772_v14 = vmul.f32 %v1835_v24, %v1835_v24  ;;  %v1850_v7 = vsub.f32 %v1739_v27, %v734_v52 }
 0x19d   :  { %v799_v57 = vadd.f32 %v768_v62, %v767_v56  ;;  %v773_v16 = vmul.f32 %v1840_v11, %v1840_v11  ;;  %v1855_v18 = vsub.f32 %v1737_v23, %v734_v52  ;;  %v774_v32 = vmul.f32 %v1845_v10, %v1845_v10 }
 0x19e   :  { %v1860_v15 = vsub.f32 %v1745_v38, %v734_v52  ;;  %v775_v21 = vmul.f32 %v1850_v7, %v1850_v7  ;;  %v1865_v27 = vsub.f32 %v1743_v34, %v734_v52  ;;  %v1870_v23 = vsub.f32 %v1751_v49, %v734_v52 }
 0x19f   :  { %v800_v9 = vadd.f32 %v799_v57, %v769_v60  ;;  %v776_v25 = vmul.f32 %v1855_v18, %v1855_v18  ;;  %v1875_v38 = vsub.f32 %v1749_v45, %v734_v52  ;;  %v1880_v34 = vsub.f32 %v1757_v59, %v734_v52 }
 0x1a0   :  { %v777_v44 = vmul.f32 %v1860_v15, %v1860_v15  ;;  %v778_v33 = vmul.f32 %v1865_v27, %v1865_v27  ;;  %v779_v40 = vmul.f32 %v1870_v23, %v1870_v23  ;;  %v782_v29 = vmul.f32 %v1777_v50, %v1777_v50 }
 0x1a1   :  { %v801_v13 = vadd.f32 %v800_v9, %v770_v3  ;;  %v780_v49 = vmul.f32 %v1875_v38, %v1875_v38  ;;  %v781_v43 = vmul.f32 %v1880_v34, %v1880_v34  ;;  %v783_v59 = vmul.f32 %v1780_v48, %v1780_v48 }
 0x1a2   :  { %v784_v56 = vmul.f32 %v1783_v51, %v1783_v51  ;;  %v785_v60 = vmul.f32 %v1785_v53, %v1785_v53  ;;  %v786_v3 = vmul.f32 %v1787_v58, %v1787_v58 }
 0x1a3   :  { %v802_v36 = vadd.f32 %v801_v13, %v771_v63  ;;  %v787_v63 = vmul.f32 %v1789_v61, %v1789_v61 }
 0x1a5   :  { %v803_v17 = vadd.f32 %v802_v36, %v772_v14  ;;  %v788_v14 = vmul.f32 %v1791_v0, %v1791_v0 }
 0x1a7   :  { %v804_v19 = vadd.f32 %v803_v17, %v773_v16  ;;  %v789_v16 = vmul.f32 %v1793_v1, %v1793_v1 }
 0x1a9   :  { %v805_v22 = vadd.f32 %v804_v19, %v774_v32  ;;  %v790_v32 = vmul.f32 %v1795_v2, %v1795_v2 }
 0x1ab   :  { %v806_v26 = vadd.f32 %v805_v22, %v775_v21  ;;  %v791_v21 = vmul.f32 %v1797_v55, %v1797_v55 }
 0x1ad   :  { %v807_v31 = vadd.f32 %v806_v26, %v776_v25  ;;  %v792_v25 = vmul.f32 %v1799_v6, %v1799_v6 }
 0x1af   :  { %v808_v35 = vadd.f32 %v807_v31, %v777_v44  ;;  %v793_v44 = vmul.f32 %v1801_v5, %v1801_v5 }
 0x1b1   :  { %v809_v37 = vadd.f32 %v808_v35, %v778_v33  ;;  %v794_v33 = vmul.f32 %v1803_v12, %v1803_v12 }
 0x1b3   :  { %v810_v39 = vadd.f32 %v809_v37, %v779_v40  ;;  %v795_v40 = vmul.f32 %v1805_v20, %v1805_v20 }
 0x1b5   :  { %v811_v45 = vadd.f32 %v810_v39, %v780_v49  ;;  %v796_v49 = vmul.f32 %v1807_v30, %v1807_v30 }
 0x1b7   :  { %v812_v46 = vadd.f32 %v811_v45, %v781_v43  ;;  %v797_v43 = vmul.f32 %v1809_v41, %v1809_v41 }
 0x1b9   :  { %v813_v52 = vadd.f32 %v812_v46, %v782_v29  ;;  %v798_v29 = vmul.f32 %v1811_v54, %v1811_v54 }
 0x1bb   :  { %v814_v62 = vadd.f32 %v813_v52, %v783_v59 }
 0x1bd   :  { %v815_v57 = vadd.f32 %v814_v62, %v784_v56 }
 0x1bf   :  { %v816_v9 = vadd.f32 %v815_v57, %v785_v60 }
 0x1c1   :  { %v817_v13 = vadd.f32 %v816_v9, %v786_v3 }
 0x1c3   :  { %v818_v36 = vadd.f32 %v817_v13, %v787_v63  ;;  %v842_v13 = vlaneseq }
 0x1c5   :  { %v819_v17 = vadd.f32 %v818_v36, %v788_v14  ;;  %v843_v14 = vshrl.u32 %v842_v13, 7  ;;  %v839_v36 = vld [vmem:[%s2015_s2] sm:$0x1]  ;;  %s1210_s2 = smov [#allocation2]  }
 0x1c7   :  { %v820_v19 = vadd.f32 %v819_v17, %v789_v16  ;;  %v844_v16 = vsub.s32 0, %v843_v14 }
 0x1c9   :  { %v821_v22 = vadd.f32 %v820_v19, %v790_v32 }
 0x1cb   :  { %v822_v26 = vadd.f32 %v821_v22, %v791_v21  ;;  %v1928_v21 = vld [vmem:[%s2016_s3] ss:$0 sm:$0xff]  ;;  %s955_s3 = sshll.u32 %s1210_s2, 4  ;;  %s1990_s3 = int_to_ptr.vmem [resolvable:$true] %s955_s3 }
 0x1cc   :  { %s1185_s15 = scalar_lea.vmem %s1990_s3, 4096  ;;  %p1190_p1 = scmp.lt.s32.totalorder %s1990_s3, %s1990_s3 }
 0x1cd   :  { %v823_v31 = vadd.f32 %v822_v26, %v792_v25  ;;  %p1186_p0 = scmp.ne.s32.totalorder %s1990_s3, %s1185_s15  ;;  %p1191_p2 = scmp.lt.s32.totalorder %s1185_s15, %s1185_s15 }
 0x1cf   :  { %v824_v35 = vadd.f32 %v823_v31, %v793_v44  ;;  %p1192_p3 = por %p1191_p2, %p1190_p1 }
 0x1d1   :  { %v825_v37 = vadd.f32 %v824_v35, %v794_v33  ;;  %p1193_p4 = pnand %p1192_p3, %p1186_p0 }
 0x1d3   :  { %v826_v39 = vadd.f32 %v825_v37, %v795_v40 }
 0x1d5   :  { %v827_v45 = vadd.f32 %v826_v39, %v796_v49 }
 0x1d7   :  { %v828_v46 = vadd.f32 %v827_v45, %v797_v43 }
 0x1d9   :  { %v829_v59 = vadd.f32 %v828_v46, %v798_v29 }
 0x1db   :  { %v830_v52 = vrot.slane %v829_v59, 4 }
 0x1dd   :  { %v831_v56 = vadd.f32 %v830_v52, %v829_v59 }
 0x1df   :  { %v832_v62 = vrot.slane %v831_v56, 2 }
 0x1e1   :  { %v833_v60 = vadd.f32 %v832_v62, %v831_v56 }
 0x1e3   :  { %v834_v57 = vrot.slane %v833_v60, 1 }
 0x1e5   :  { %v835_v3 = vadd.f32 %v834_v57, %v833_v60 }
 0x1e7   :  { %v836_v9 = vmul.f32 0.00390625, %v835_v3 }
 0x1e9   :  { %v837_v63 = vadd.f32 0.001, %v836_v9 }
 0x1eb   :  { %1183 = vrsqrt.f32 %v837_v63 }
 0x1f5   :  { %v1184_v17 = vpop.eup %1183 }
 0x1f6   :  { %v840_v32 = vmul.f32 %v1184_v17, %v839_v36 }
 0x1f8   :  { %v845_v19 = vrot.slane %v840_v32, %v844_v16 }
 0x1fa   :  { %v877_v22 = vmul.f32 %v845_v19, %v1809_v41  ;;  %v847_v25 = vmul.f32 %v845_v19, %v1814_v4  ;;  %v848_v26 = vmul.f32 %v845_v19, %v1817_v47  ;;  %v849_v44 = vmul.f32 %v845_v19, %v1820_v42 }
 0x1fb   :  { %v850_v31 = vmul.f32 %v845_v19, %v1827_v28  ;;  %v851_v33 = vmul.f32 %v845_v19, %v1830_v8  ;;  %v852_v35 = vmul.f32 %v845_v19, %v1835_v24  ;;  %v853_v40 = vmul.f32 %v845_v19, %v1840_v11 }
 0x1fc   :  { %v916_v37 = vadd.f32 %v1928_v21, %v877_v22  ;;  %v854_v49 = vmul.f32 %v845_v19, %v1845_v10  ;;  %v855_v41 = vmul.f32 %v845_v19, %v1850_v7  ;;  %v856_v4 = vmul.f32 %v845_v19, %v1855_v18 }
 0x1fd   :  { %v857_v47 = vmul.f32 %v845_v19, %v1860_v15  ;;  %v858_v42 = vmul.f32 %v845_v19, %v1865_v27  ;;  %v859_v28 = vmul.f32 %v845_v19, %v1870_v23  ;;  %v860_v8 = vmul.f32 %v845_v19, %v1875_v38 }
 0x1fe   :  { %948 = vst [vmem:[#allocation2 + $0xf0] sm:$0xff] %v916_v37  ;;  %v861_v24 = vmul.f32 %v845_v19, %v1880_v34  ;;  %v862_v11 = vmul.f32 %v845_v19, %v1777_v50  ;;  %v863_v39 = vmul.f32 %v845_v19, %v1780_v48  ;;  %v864_v10 = vmul.f32 %v845_v19, %v1783_v51 }
 0x1ff   :  { %v865_v7 = vmul.f32 %v845_v19, %v1785_v53  ;;  %v866_v18 = vmul.f32 %v845_v19, %v1787_v58  ;;  %v867_v15 = vmul.f32 %v845_v19, %v1789_v61  ;;  %v868_v27 = vmul.f32 %v845_v19, %v1791_v0 }
 0x200   :  { %v869_v23 = vmul.f32 %v845_v19, %v1793_v1  ;;  %v870_v38 = vmul.f32 %v845_v19, %v1795_v2  ;;  %v871_v34 = vmul.f32 %v845_v19, %v1797_v55  ;;  %v872_v50 = vmul.f32 %v845_v19, %v1799_v6 }
 0x201   :  { %v873_v48 = vmul.f32 %v845_v19, %v1801_v5  ;;  %v874_v51 = vmul.f32 %v845_v19, %v1803_v12  ;;  %v875_v53 = vmul.f32 %v845_v19, %v1805_v20  ;;  %v876_v58 = vmul.f32 %v845_v19, %v1807_v30 }
 0x202   :  { %v878_v61 = vmul.f32 %v845_v19, %v1811_v54  ;;  %v886_v0 = vadd.f32 %v1928_v21, %v847_v25  ;;  %v887_v1 = vadd.f32 %v1928_v21, %v848_v26  ;;  %v888_v2 = vadd.f32 %v1928_v21, %v849_v44 }
 0x203   :  { %v889_v55 = vadd.f32 %v1928_v21, %v850_v31  ;;  %v890_v6 = vadd.f32 %v1928_v21, %v851_v33  ;;  %v891_v5 = vadd.f32 %v1928_v21, %v852_v35  ;;  %v892_v12 = vadd.f32 %v1928_v21, %v853_v40 }
 0x204   :  { %v893_v20 = vadd.f32 %v1928_v21, %v854_v49  ;;  %v894_v30 = vadd.f32 %v1928_v21, %v855_v41  ;;  %v895_v54 = vadd.f32 %v1928_v21, %v856_v4  ;;  %v896_v43 = vadd.f32 %v1928_v21, %v857_v47  ;;  %918 = vst [vmem:[#allocation2] sm:$0xff] %v886_v0 }
 0x205   :  { %919 = vst [vmem:[#allocation2 + $0x8] sm:$0xff] %v887_v1  ;;  %920 = vst [vmem:[#allocation2 + $0x10] sm:$0xff] %v888_v2  ;;  %v897_v45 = vadd.f32 %v1928_v21, %v858_v42  ;;  %v898_v29 = vadd.f32 %v1928_v21, %v859_v28  ;;  %v899_v46 = vadd.f32 %v1928_v21, %v860_v8 }
 0x206   :  { %v900_v59 = vadd.f32 %v1928_v21, %v861_v24  ;;  %921 = vst [vmem:[#allocation2 + $0x18] sm:$0xff] %v889_v55  ;;  %922 = vst [vmem:[#allocation2 + $0x20] sm:$0xff] %v890_v6  ;;  %v901_v52 = vadd.f32 %v1928_v21, %v862_v11  ;;  %v902_v56 = vadd.f32 %v1928_v21, %v863_v39 }
 0x207   :  { %923 = vst [vmem:[#allocation2 + $0x28] sm:$0xff] %v891_v5  ;;  %924 = vst [vmem:[#allocation2 + $0x30] sm:$0xff] %v892_v12  ;;  %v903_v62 = vadd.f32 %v1928_v21, %v864_v10  ;;  %v904_v60 = vadd.f32 %v1928_v21, %v865_v7  ;;  %v905_v57 = vadd.f32 %v1928_v21, %v866_v18 }
 0x208   :  { %925 = vst [vmem:[#allocation2 + $0x38] sm:$0xff] %v893_v20  ;;  %926 = vst [vmem:[#allocation2 + $0x40] sm:$0xff] %v894_v30  ;;  %v906_v3 = vadd.f32 %v1928_v21, %v867_v15  ;;  %v907_v9 = vadd.f32 %v1928_v21, %v868_v27  ;;  %v908_v63 = vadd.f32 %v1928_v21, %v869_v23 }
 0x209   :  { %927 = vst [vmem:[#allocation2 + $0x48] sm:$0xff] %v895_v54  ;;  %928 = vst [vmem:[#allocation2 + $0x50] sm:$0xff] %v896_v43  ;;  %v909_v13 = vadd.f32 %v1928_v21, %v870_v38  ;;  %v910_v14 = vadd.f32 %v1928_v21, %v871_v34  ;;  %v911_v36 = vadd.f32 %v1928_v21, %v872_v50 }
 0x20a   :  { %929 = vst [vmem:[#allocation2 + $0x58] sm:$0xff] %v897_v45  ;;  %930 = vst [vmem:[#allocation2 + $0x60] sm:$0xff] %v898_v29  ;;  %v912_v16 = vadd.f32 %v1928_v21, %v873_v48  ;;  %v913_v17 = vadd.f32 %v1928_v21, %v874_v51  ;;  %v914_v32 = vadd.f32 %v1928_v21, %v875_v53 }
 0x20b   :  { %931 = vst [vmem:[#allocation2 + $0x68] sm:$0xff] %v899_v46  ;;  %932 = vst [vmem:[#allocation2 + $0x70] sm:$0xff] %v900_v59  ;;  %v915_v19 = vadd.f32 %v1928_v21, %v876_v58  ;;  %v917_v22 = vadd.f32 %v1928_v21, %v878_v61 }
 0x20c   :  { %933 = vst [vmem:[#allocation2 + $0x78] sm:$0xff] %v901_v52  ;;  %934 = vst [vmem:[#allocation2 + $0x80] sm:$0xff] %v902_v56 }
 0x20d   :  { %935 = vst [vmem:[#allocation2 + $0x88] sm:$0xff] %v903_v62  ;;  %936 = vst [vmem:[#allocation2 + $0x90] sm:$0xff] %v904_v60 }
 0x20e   :  { %937 = vst [vmem:[#allocation2 + $0x98] sm:$0xff] %v905_v57  ;;  %938 = vst [vmem:[#allocation2 + $0xa0] sm:$0xff] %v906_v3 }
 0x20f   :  { %939 = vst [vmem:[#allocation2 + $0xa8] sm:$0xff] %v907_v9  ;;  %940 = vst [vmem:[#allocation2 + $0xb0] sm:$0xff] %v908_v63 }
 0x210   :  { %941 = vst [vmem:[#allocation2 + $0xb8] sm:$0xff] %v909_v13  ;;  %942 = vst [vmem:[#allocation2 + $0xc0] sm:$0xff] %v910_v14 }
 0x211   :  { %943 = vst [vmem:[#allocation2 + $0xc8] sm:$0xff] %v911_v36  ;;  %944 = vst [vmem:[#allocation2 + $0xd0] sm:$0xff] %v912_v16 }
 0x212   :  { %945 = vst [vmem:[#allocation2 + $0xd8] sm:$0xff] %v913_v17  ;;  %946 = vst [vmem:[#allocation2 + $0xe0] sm:$0xff] %v914_v32 }
 0x213   :  { %947 = vst [vmem:[#allocation2 + $0xe8] sm:$0xff] %v915_v19  ;;  %949 = vst [vmem:[#allocation2 + $0xf8] sm:$0xff] %v917_v22 }
 0x214   :  { %1196 = shalt.err (!%p1193_p4)
}
 0x215   :  { %s1197_s18 = scalar_lea.hbm %s2017_s4, 4096 }
 0x216   :  { %p1198_p5 = scmp.ne.s32.totalorder %s2017_s4, %s1197_s18  ;;  %p1201_p6 = scmp.lt.u32.totalorder %s1197_s18, %s2017_s4 }
 0x218   :  { %p1203_p7 = pnand %p1201_p6, %p1198_p5 }
 0x21a   :  { %1206 = shalt.err (!%p1203_p7)
}
 0x21b   :  { %s1211_s22 = smov 128   ;;  %s1212_s23 = smov 8  }
 0x21c   :  { %961 = dma.vmem_to_hbm [thread:$0]  %s1990_s3, 4096, %s2017_s4, [#allocation3], %s1211_s22, %s1211_s22, %s1212_s23  }
 0x21d   :  { %1207 = dma.done.wait [#allocation3], 4096  }
 0x21e   :  { %1208 = vsyncadd [#allocation3], 4294963200 }
 0x21f   :  { %965 = vsyncpa [#allocation3], 1 }

</bundles_post_ra>
